<compile_context>
chip_gen: v5e
topology: v5e:2x2
jax: 0.10.0
libtpu: 0.0.40
codegen_flags: <defaults>
</compile_context>

<pallas_src>
import jax
import jax.numpy as jnp
from jax.experimental import pallas as pl
from jax.experimental.pallas import tpu as pltpu


TASK_GROUPS = (
    {"type": "segmentation"},
    {"type": "depth"},
    {"type": "normals"},
)


# ----------------------------------------------------------------------------
# Tiling helpers
# ----------------------------------------------------------------------------
def _cdiv(a, b):
    return -(-a // b)


def _round_up(x, m):
    return ((x + m - 1) // m) * m


def _tpu_vmem_capacity():
    """Per-TensorCore VMEM bytes (generation-aware); conservative fallback."""
    try:
        info = pltpu.get_tpu_info()
        cap = int(getattr(info, "vmem_capacity_bytes", 0) or 0)
        if cap > 0:
            return cap
    except Exception:
        pass
    return 64 << 20  # v7x per-TC size: safe everywhere


def _padded_lane_bytes(a):
    """Conservative VMEM bytes contributed per spatial lane by one input block,
    accounting for sublane padding of the second-to-last dim (>= real usage for
    any dtype <= 4 bytes, since narrower dtypes pack more sublanes)."""
    if a.ndim == 2:
        return 4 * _round_up(a.shape[0], 8)
    return 4 * a.shape[0] * _round_up(a.shape[1], 8)


def _choose_tiling(hw, bytes_per_lane, block_lanes=None):
    """Pick (block_lanes, num_blocks, vmem_limit_bytes) from the VMEM byte budget."""
    cap = _tpu_vmem_capacity()
    # ~14 MiB aggregate input blocks on 64 MiB-VMEM parts (v7x), ~28 MiB on 128 MiB parts.
    target = (14 << 20) if cap <= (80 << 20) else (28 << 20)

    if block_lanes is not None:
        bl = max(128, _round_up(int(block_lanes), 128))
    else:
        max_bl = max(128, (target // max(bytes_per_lane, 1)) // 128 * 128)
        hw128 = _round_up(hw, 128)
        if hw128 <= max_bl:
            bl = hw128
        else:
            # choose number of blocks first, then per-row-rounded width -> waste < 128 lanes
            nb_target = _cdiv(hw128, max_bl)
            bl = _round_up(_cdiv(hw, nb_target), 128)

    nb = _cdiv(hw, bl)
    block_bytes = bytes_per_lane * bl
    vmem_limit = int(
        min(
            max(32 << 20, 2 * block_bytes + (8 << 20)),   # double-buffered blocks + headroom
            max(cap - (16 << 20), 32 << 20),               # never above physical capacity
        )
    )
    return bl, nb, vmem_limit


# ----------------------------------------------------------------------------
# In-kernel block reductions (lane-masked: handles the ragged last block)
# ----------------------------------------------------------------------------
def _lane_mask(block_index, bl, hw, ndim, lanes):
    shape = (1,) * (ndim - 1) + (lanes,)
    lane = block_index * bl + jax.lax.broadcasted_iota(jnp.int32, shape, ndim - 1)
    return lane < hw


def _bce_block_sum(p_ref, g_ref, block_index, bl, hw):
    """sum over in-bounds lanes of -(g*log(p) + (1-g)*log(1-p)), logs clamped at -100
    (matches torch.nn.functional.binary_cross_entropy)."""
    p = p_ref[...].astype(jnp.float32)
    g = g_ref[...].astype(jnp.float32)
    in_bounds = _lane_mask(block_index, bl, hw, p.ndim, p.shape[-1])
    log_p = jnp.maximum(jnp.log(p), -100.0)
    log_1mp = jnp.maximum(jnp.log(1.0 - p), -100.0)
    bce = -(g * log_p + (1.0 - g) * log_1mp)
    return jnp.sum(jnp.where(in_bounds, bce, 0.0))


def _masked_block_sums(p_ref, g_ref, block_index, bl, hw, elementwise_fn):
    """Validity mask = (per-pixel channel sum of gt != 0) AND lane-in-bounds.
    2-D refs (N, BL) are the C==1 specialization (mask = g != 0, no channel reduce).
    Returns (sum over valid pixels of sum_c elementwise_fn(p, g), #valid pixels)."""
    p = p_ref[...].astype(jnp.float32)
    g = g_ref[...].astype(jnp.float32)
    in_bounds = _lane_mask(block_index, bl, hw, p.ndim, p.shape[-1])
    if p.ndim == 2:
        valid = (g != 0.0) & in_bounds                                    # (N, BL)
        contrib = elementwise_fn(p, g)                                    # (N, BL)
    else:
        valid = (jnp.sum(g, axis=1, keepdims=True) != 0.0) & in_bounds    # (N, 1, BL)
        contrib = jnp.sum(elementwise_fn(p, g), axis=1, keepdims=True)    # (N, 1, BL)
    s = jnp.sum(jnp.where(valid, contrib, 0.0))
    cnt = jnp.sum(valid.astype(jnp.float32))
    return s, cnt


def _accum_scalar(out_ref, idx, value, is_first):
    """Accumulate a scalar partial into the SMEM-resident output at static index idx."""
    @pl.when(is_first)
    def _():
        out_ref[idx] = value

    @pl.when(jnp.logical_not(is_first))
    def _():
        out_ref[idx] = out_ref[idx] + value


# ----------------------------------------------------------------------------
# pallas_call driver: tiled 1-D spatial grid, partial sums accumulated in SMEM
# ----------------------------------------------------------------------------
def _block_spec_for(a, bl):
    if a.ndim == 2:
        return pl.BlockSpec((a.shape[0], bl), lambda i: (0, i))
    return pl.BlockSpec((a.shape[0], a.shape[1], bl), lambda i: (0, 0, i))


def _reduce_call(kernel, n_out, arrays, bl, nb, vmem_limit):
    in_specs = [_block_spec_for(a, bl) for a in arrays]
    return pl.pallas_call(
        kernel,
        out_shape=jax.ShapeDtypeStruct((n_out,), jnp.float32),
        grid=(nb,),
        in_specs=in_specs,
        # Tiny accumulator stays resident in SMEM across the whole grid.
        out_specs=pl.BlockSpec(memory_space=pltpu.MemorySpace.SMEM),
        compiler_params=pltpu.CompilerParams(
            dimension_semantics=("arbitrary",),
            vmem_limit_bytes=vmem_limit,
        ),
    )(*arrays)


# ----------------------------------------------------------------------------
# Per-task losses (Pallas-backed; used for the `group=...` path and fallbacks)
# ----------------------------------------------------------------------------
def mean_bce_loss(pred, gt, block_lanes=None):
    n, c, h, w = pred.shape
    hw = h * w
    p = pred.reshape(n * c, hw)
    g = gt.reshape(n * c, hw)
    bpl = _padded_lane_bytes(p) + _padded_lane_bytes(g)
    bl, nb, vlim = _choose_tiling(hw, bpl, block_lanes)

    def kernel(p_ref, g_ref, out_ref):
        i = pl.program_id(0)
        _accum_scalar(out_ref, 0, _bce_block_sum(p_ref, g_ref, i, bl, hw), i == 0)

    sums = _reduce_call(kernel, 1, [p, g], bl, nb, vlim)
    return sums[0] / jnp.float32(pred.size)


def _masked_loss(pred, gt, elementwise_fn, block_lanes):
    n, c, h, w = pred.shape
    hw = h * w
    if c == 1:  # dense 2-D layout: no sublane waste, no channel reduce
        p, g = pred.reshape(n, hw), gt.reshape(n, hw)
    else:
        p, g = pred.reshape(n, c, hw), gt.reshape(n, c, hw)
    bpl = _padded_lane_bytes(p) + _padded_lane_bytes(g)
    bl, nb, vlim = _choose_tiling(hw, bpl, block_lanes)

    def kernel(p_ref, g_ref, out_ref):
        i = pl.program_id(0)
        s, cnt = _masked_block_sums(p_ref, g_ref, i, bl, hw, elementwise_fn)
        first = i == 0
        _accum_scalar(out_ref, 0, s, first)
        _accum_scalar(out_ref, 1, cnt, first)

    sums = _reduce_call(kernel, 2, [p, g], bl, nb, vlim)
    return sums[0], sums[1]


def l1_loss(pred, gt, block_lanes=None):
    s, cnt = _masked_loss(pred, gt, lambda a, b: jnp.abs(a - b), block_lanes)
    return s / cnt  # NaN/Inf if no valid pixels, matching the PyTorch module


def normal_loss(pred, gt, block_lanes=None):
    s, cnt = _masked_loss(pred, gt, lambda a, b: a * b, block_lanes)
    return 1.0 - s / cnt


_TASK_LOSSES = {
    "segmentation": mean_bce_loss,
    "depth": l1_loss,
    "normals": normal_loss,
}


# ----------------------------------------------------------------------------
# Forward (mirrors NYUv2Loss.forward with idp_seg_tasks=False, BCE-mean seg loss)
# ----------------------------------------------------------------------------
def nyuv2_loss_forward(preds, gts, group=None, block_lanes=None):
    if group is not None:
        fn = _TASK_LOSSES[TASK_GROUPS[group]["type"]]
        return fn(preds, gts[group], block_lanes=block_lanes)

    # Fused path needs the three tasks to share H*W (true for NYUv2); else fall back.
    spatial = {int(p.shape[2]) * int(p.shape[3]) for p in preds}
    if len(preds) != 3 or len(spatial) != 1:
        return jnp.stack(
            [
                _TASK_LOSSES[TASK_GROUPS[k]["type"]](
                    preds[k], gts[k], block_lanes=block_lanes
                )
                for k in range(len(preds))
            ]
        )

    sp4, dp4, np4 = preds
    sg4, dg4, ng4 = gts
    ns, cs, h, w = sp4.shape
    hw = h * w

    sp, sg = sp4.reshape(ns * cs, hw), sg4.reshape(ns * cs, hw)
    nd, cd = dp4.shape[0], dp4.shape[1]
    if cd == 1:
        dp, dg = dp4.reshape(nd, hw), dg4.reshape(nd, hw)
    else:
        dp, dg = dp4.reshape(nd, cd, hw), dg4.reshape(nd, cd, hw)
    nn, cn = np4.shape[0], np4.shape[1]
    if cn == 1:
        npd, ngt = np4.reshape(nn, hw), ng4.reshape(nn, hw)
    else:
        npd, ngt = np4.reshape(nn, cn, hw), ng4.reshape(nn, cn, hw)

    arrays = [sp, sg, dp, dg, npd, ngt]
    bpl = sum(_padded_lane_bytes(a) for a in arrays)
    bl, nb, vlim = _choose_tiling(hw, bpl, block_lanes)

    def kernel(sp_ref, sg_ref, dp_ref, dg_ref, np_ref, ng_ref, out_ref):
        i = pl.program_id(0)
        first = i == 0
        seg_s = _bce_block_sum(sp_ref, sg_ref, i, bl, hw)
        d_s, d_c = _masked_block_sums(dp_ref, dg_ref, i, bl, hw, lambda a, b: jnp.abs(a - b))
        n_s, n_c = _masked_block_sums(np_ref, ng_ref, i, bl, hw, lambda a, b: a * b)
        _accum_scalar(out_ref, 0, seg_s, first)
        _accum_scalar(out_ref, 1, d_s, first)
        _accum_scalar(out_ref, 2, d_c, first)
        _accum_scalar(out_ref, 3, n_s, first)
        _accum_scalar(out_ref, 4, n_c, first)

    sums = _reduce_call(kernel, 5, arrays, bl, nb, vlim)
    seg = sums[0] / jnp.float32(sp4.size)   # BCE mean over all (unpadded) elements
    dep = sums[1] / sums[2]
    nrm = 1.0 - sums[3] / sums[4]
    return jnp.stack([seg, dep, nrm])


# ----------------------------------------------------------------------------
# Pure-JAX reference (for verification)
# ----------------------------------------------------------------------------
def _ref_forward(preds, gts):
    def ref_bce(p, g):
        p = p.astype(jnp.float32)
        g = g.astype(jnp.float32)
        lp = jnp.maximum(jnp.log(p), -100.0)
        l1mp = jnp.maximum(jnp.log(1.0 - p), -100.0)
        return jnp.mean(-(g * lp + (1.0 - g) * l1mp))

    def ref_l1(p, g):
        p = p.astype(jnp.float32)
        g = g.astype(jnp.float32)
        m = (jnp.sum(g, axis=1, keepdims=True) != 0.0).astype(jnp.float32)
        return jnp.sum(jnp.abs(p - g) * m) / jnp.sum(m)

    def ref_normal(p, g):
        p = p.astype(jnp.float32)
        g = g.astype(jnp.float32)
        m = (jnp.sum(g, axis=1, keepdims=True) != 0.0).astype(jnp.float32)
        return 1.0 - jnp.sum(p * g * m) / jnp.sum(m)

    fns = [ref_bce, ref_l1, ref_normal]
    return jnp.stack([fns[k](preds[k], gts[k]) for k in range(3)])


# ----------------------------------------------------------------------------
if __name__ == "__main__":
    key = jax.random.PRNGKey(0)
    keys = jax.random.split(key, 8)

    N, H, W = 2, 16, 16
    C_SEG, C_DEPTH, C_NORM = 4, 1, 3

    # segmentation: pred in (0,1), gt is 0/1 float
    pred_seg = jax.nn.sigmoid(jax.random.normal(keys[0], (N, C_SEG, H, W), jnp.float32))
    gt_seg = (jax.random.uniform(keys[1], (N, C_SEG, H, W)) > 0.5).astype(jnp.float32)

    # depth: positive values, with some ground-truth pixels zeroed (invalid depth)
    pred_depth = jax.random.uniform(keys[2], (N, C_DEPTH, H, W), jnp.float32, 0.1, 5.0)
    gt_depth = jax.random.uniform(keys[3], (N, C_DEPTH, H, W), jnp.float32, 0.1, 5.0)
    invalid_d = jax.random.uniform(keys[4], (N, 1, H, W)) > 0.8
    gt_depth = jnp.where(invalid_d, 0.0, gt_depth)

    # normals: unit vectors, some ground-truth pixels zeroed
    def _unit(x):
        return x / jnp.linalg.norm(x, axis=1, keepdims=True)

    pred_norm = _unit(jax.random.normal(keys[5], (N, C_NORM, H, W), jnp.float32))
    gt_norm = _unit(jax.random.normal(keys[6], (N, C_NORM, H, W), jnp.float32))
    invalid_n = jax.random.uniform(keys[7], (N, 1, H, W)) > 0.8
    gt_norm = jnp.where(invalid_n, 0.0, gt_norm)

    preds = (pred_seg, pred_depth, pred_norm)
    gts = (gt_seg, gt_depth, gt_norm)

    ref = jax.block_until_ready(_ref_forward(preds, gts))

    # fused call, forced 128-lane blocks -> 2 grid steps (exercises multi-block accumulation)
    losses = jax.block_until_ready(nyuv2_loss_forward(preds, gts, block_lanes=128))
    assert losses.shape == (3,)
    assert jnp.allclose(losses, ref, rtol=1e-5, atol=1e-5), (losses, ref)

    # fused call, auto tile size (single block at this small shape)
    losses_auto = jax.block_until_ready(nyuv2_loss_forward(preds, gts))
    assert jnp.allclose(losses_auto, ref, rtol=1e-5, atol=1e-5), (losses_auto, ref)

    # odd spatial size -> exercises the ragged in-kernel lane-mask path (no host padding)
    preds_odd = tuple(p[:, :, :7, :9] for p in preds)
    gts_odd = tuple(g[:, :, :7, :9] for g in gts)
    losses_odd = jax.block_until_ready(nyuv2_loss_forward(preds_odd, gts_odd))
    ref_odd = jax.block_until_ready(_ref_forward(preds_odd, gts_odd))
    assert jnp.allclose(losses_odd, ref_odd, rtol=1e-5, atol=1e-5), (losses_odd, ref_odd)

    # native-dtype reads: bf16 predictions, f32 ground truths (cast happens in-register)
    preds_bf16 = tuple(p.astype(jnp.bfloat16) for p in preds)
    ref_bf16 = jax.block_until_ready(_ref_forward(preds_bf16, gts))
    losses_bf16 = jax.block_until_ready(nyuv2_loss_forward(preds_bf16, gts))
    assert jnp.allclose(losses_bf16, ref_bf16, rtol=1e-5, atol=1e-5), (losses_bf16, ref_bf16)

    # single-group code paths
    single_seg = jax.block_until_ready(nyuv2_loss_forward(pred_seg, gts, group=0))
    single_dep = jax.block_until_ready(
        nyuv2_loss_forward(pred_depth, gts, group=1, block_lanes=128)
    )
    single_nrm = jax.block_until_ready(nyuv2_loss_forward(pred_norm, gts, group=2))
    assert jnp.allclose(single_seg, ref[0], rtol=1e-5, atol=1e-5)
    assert jnp.allclose(single_dep, ref[1], rtol=1e-5, atol=1e-5)
    assert jnp.allclose(single_nrm, ref[2], rtol=1e-5, atol=1e-5)

    print("KERNEL_OK")
</pallas_src>

<mosaic_0001>
module attributes {stable_mosaic.version = 11 : i64} {
  func.func @kernel(%arg0: i32, %arg1: memref<8x128xf32, #tpu.memory_space<vmem>>, %arg2: memref<8x128xf32, #tpu.memory_space<vmem>>, %arg3: memref<2x128xf32, #tpu.memory_space<vmem>>, %arg4: memref<2x128xf32, #tpu.memory_space<vmem>>, %arg5: memref<2x3x128xf32, #tpu.memory_space<vmem>>, %arg6: memref<2x3x128xf32, #tpu.memory_space<vmem>>, %arg7: memref<5xf32, #tpu.memory_space<smem>>) attributes {dimension_semantics = [#tpu.dimension_semantics<arbitrary>], iteration_bounds = array<i64: 2>, scalar_prefetch = 0 : i64, scratch_operands = 0 : i64, tpu.core_type = #tpu.core_type<tc>, window_params = [{transform_indices = @transform_0, window_bounds = array<i64: 8, 128>}, {transform_indices = @transform_1, window_bounds = array<i64: 8, 128>}, {transform_indices = @transform_2, window_bounds = array<i64: 2, 128>}, {transform_indices = @transform_3, window_bounds = array<i64: 2, 128>}, {transform_indices = @transform_4, window_bounds = array<i64: 2, 3, 128>}, {transform_indices = @transform_5, window_bounds = array<i64: 2, 3, 128>}, {transform_indices = @transform_6, window_bounds = array<i64: 5>}]} {
    %c0_i32 = arith.constant 0 : i32
    %0 = arith.cmpi eq, %arg0, %c0_i32 : i32
    %c0 = arith.constant 0 : index
    %c0_0 = arith.constant 0 : index
    %1 = vector.load %arg1[%c0, %c0_0] : memref<8x128xf32, #tpu.memory_space<vmem>>, vector<8x128xf32>
    %c0_1 = arith.constant 0 : index
    %c0_2 = arith.constant 0 : index
    %2 = vector.load %arg2[%c0_1, %c0_2] : memref<8x128xf32, #tpu.memory_space<vmem>>, vector<8x128xf32>
    %c128_i32 = arith.constant 128 : i32
    %3 = arith.muli %arg0, %c128_i32 : i32
    %4 = tpu.iota {dimensions = array<i32: 1>} : vector<1x128xi32>
    %5 = vector.broadcast %3 : i32 to vector<1x128xi32>
    %6 = arith.addi %5, %4 : vector<1x128xi32>
    %c256_i32 = arith.constant 256 : i32
    %7 = vector.broadcast %c256_i32 : i32 to vector<1x128xi32>
    %8 = arith.cmpi slt, %6, %7 : vector<1x128xi32>
    %9 = math.log %1 : vector<8x128xf32>
    %cst = arith.constant -1.000000e+02 : f32
    %10 = vector.broadcast %cst : f32 to vector<8x128xf32>
    %11 = arith.maximumf %9, %10 : vector<8x128xf32>
    %cst_3 = arith.constant 1.000000e+00 : f32
    %12 = vector.broadcast %cst_3 : f32 to vector<8x128xf32>
    %13 = arith.subf %12, %1 : vector<8x128xf32>
    %14 = math.log %13 : vector<8x128xf32>
    %cst_4 = arith.constant -1.000000e+02 : f32
    %15 = vector.broadcast %cst_4 : f32 to vector<8x128xf32>
    %16 = arith.maximumf %14, %15 : vector<8x128xf32>
    %17 = arith.mulf %2, %11 : vector<8x128xf32>
    %cst_5 = arith.constant 1.000000e+00 : f32
    %18 = vector.broadcast %cst_5 : f32 to vector<8x128xf32>
    %19 = arith.subf %18, %2 : vector<8x128xf32>
    %20 = arith.mulf %19, %16 : vector<8x128xf32>
    %21 = arith.addf %17, %20 : vector<8x128xf32>
    %cst_6 = arith.constant 0.000000e+00 : f32
    %22 = vector.broadcast %cst_6 : f32 to vector<8x128xf32>
    %23 = arith.subf %22, %21 : vector<8x128xf32>
    %cst_7 = arith.constant 0.000000e+00 : f32
    %24 = vector.shape_cast %8 : vector<1x128xi1> to vector<1x128xi1>
    %25 = vector.broadcast %24 : vector<1x128xi1> to vector<8x128xi1>
    %26 = vector.broadcast %cst_7 : f32 to vector<8x128xf32>
    %27 = arith.select %25, %23, %26 : vector<8x128xi1>, vector<8x128xf32>
    %28 = vector.shape_cast %27 : vector<8x128xf32> to vector<1x8x128xf32>
    %cst_8 = arith.constant dense<0.000000e+00> : vector<1xf32>
    %29 = vector.multi_reduction <add>, %28, %cst_8 [1, 2] : vector<1x8x128xf32> to vector<1xf32>
    %30 = vector.shape_cast %29 : vector<1xf32> to vector<1x1x1xf32>
    %31 = vector.extract %30[0, 0, 0] : f32 from vector<1x1x1xf32>
    %c0_9 = arith.constant 0 : index
    %c0_10 = arith.constant 0 : index
    %32 = vector.load %arg3[%c0_9, %c0_10] : memref<2x128xf32, #tpu.memory_space<vmem>>, vector<2x128xf32>
    %c0_11 = arith.constant 0 : index
    %c0_12 = arith.constant 0 : index
    %33 = vector.load %arg4[%c0_11, %c0_12] : memref<2x128xf32, #tpu.memory_space<vmem>>, vector<2x128xf32>
    %c128_i32_13 = arith.constant 128 : i32
    %34 = arith.muli %arg0, %c128_i32_13 : i32
    %35 = tpu.iota {dimensions = array<i32: 1>} : vector<1x128xi32>
    %36 = vector.broadcast %34 : i32 to vector<1x128xi32>
    %37 = arith.addi %36, %35 : vector<1x128xi32>
    %c256_i32_14 = arith.constant 256 : i32
    %38 = vector.broadcast %c256_i32_14 : i32 to vector<1x128xi32>
    %39 = arith.cmpi slt, %37, %38 : vector<1x128xi32>
    %cst_15 = arith.constant 0.000000e+00 : f32
    %40 = vector.broadcast %cst_15 : f32 to vector<2x128xf32>
    %41 = arith.cmpf one, %33, %40 : vector<2x128xf32>
    %42 = vector.broadcast %39 : vector<1x128xi1> to vector<2x128xi1>
    %43 = arith.andi %41, %42 : vector<2x128xi1>
    %44 = arith.subf %32, %33 : vector<2x128xf32>
    %45 = math.absf %44 : vector<2x128xf32>
    %cst_16 = arith.constant 0.000000e+00 : f32
    %46 = vector.broadcast %cst_16 : f32 to vector<2x128xf32>
    %47 = arith.select %43, %45, %46 : vector<2x128xi1>, vector<2x128xf32>
    %48 = vector.shape_cast %47 : vector<2x128xf32> to vector<1x2x128xf32>
    %cst_17 = arith.constant dense<0.000000e+00> : vector<1xf32>
    %49 = vector.multi_reduction <add>, %48, %cst_17 [1, 2] : vector<1x2x128xf32> to vector<1xf32>
    %50 = vector.shape_cast %49 : vector<1xf32> to vector<1x1x1xf32>
    %51 = vector.extract %50[0, 0, 0] : f32 from vector<1x1x1xf32>
    %52 = arith.extui %43 : vector<2x128xi1> to vector<2x128xi32>
    %53 = arith.sitofp %52 : vector<2x128xi32> to vector<2x128xf32>
    %54 = vector.shape_cast %53 : vector<2x128xf32> to vector<1x2x128xf32>
    %cst_18 = arith.constant dense<0.000000e+00> : vector<1xf32>
    %55 = vector.multi_reduction <add>, %54, %cst_18 [1, 2] : vector<1x2x128xf32> to vector<1xf32>
    %56 = vector.shape_cast %55 : vector<1xf32> to vector<1x1x1xf32>
    %57 = vector.extract %56[0, 0, 0] : f32 from vector<1x1x1xf32>
    %c0_19 = arith.constant 0 : index
    %c0_20 = arith.constant 0 : index
    %c0_21 = arith.constant 0 : index
    %58 = vector.load %arg5[%c0_19, %c0_20, %c0_21] : memref<2x3x128xf32, #tpu.memory_space<vmem>>, vector<2x3x128xf32>
    %c0_22 = arith.constant 0 : index
    %c0_23 = arith.constant 0 : index
    %c0_24 = arith.constant 0 : index
    %59 = vector.load %arg6[%c0_22, %c0_23, %c0_24] : memref<2x3x128xf32, #tpu.memory_space<vmem>>, vector<2x3x128xf32>
    %c128_i32_25 = arith.constant 128 : i32
    %60 = arith.muli %arg0, %c128_i32_25 : i32
    %61 = tpu.iota {dimensions = array<i32: 2>} : vector<1x1x128xi32>
    %62 = vector.broadcast %60 : i32 to vector<1x1x128xi32>
    %63 = arith.addi %62, %61 : vector<1x1x128xi32>
    %c256_i32_26 = arith.constant 256 : i32
    %64 = vector.broadcast %c256_i32_26 : i32 to vector<1x1x128xi32>
    %65 = arith.cmpi slt, %63, %64 : vector<1x1x128xi32>
    %cst_27 = arith.constant dense<0.000000e+00> : vector<2x128xf32>
    %66 = vector.multi_reduction <add>, %59, %cst_27 [1] : vector<2x3x128xf32> to vector<2x128xf32>
    %67 = vector.shape_cast %66 : vector<2x128xf32> to vector<2x1x128xf32>
    %cst_28 = arith.constant 0.000000e+00 : f32
    %68 = vector.broadcast %cst_28 : f32 to vector<2x1x128xf32>
    %69 = arith.cmpf one, %67, %68 : vector<2x1x128xf32>
    %70 = vector.broadcast %65 : vector<1x1x128xi1> to vector<2x1x128xi1>
    %71 = arith.andi %69, %70 : vector<2x1x128xi1>
    %72 = arith.mulf %58, %59 : vector<2x3x128xf32>
    %cst_29 = arith.constant dense<0.000000e+00> : vector<2x128xf32>
    %73 = vector.multi_reduction <add>, %72, %cst_29 [1] : vector<2x3x128xf32> to vector<2x128xf32>
    %74 = vector.shape_cast %73 : vector<2x128xf32> to vector<2x1x128xf32>
    %cst_30 = arith.constant 0.000000e+00 : f32
    %75 = vector.broadcast %cst_30 : f32 to vector<2x1x128xf32>
    %76 = arith.select %71, %74, %75 : vector<2x1x128xi1>, vector<2x1x128xf32>
    %77 = vector.shape_cast %76 : vector<2x1x128xf32> to vector<1x2x1x128xf32>
    %cst_31 = arith.constant dense<0.000000e+00> : vector<1xf32>
    %78 = vector.multi_reduction <add>, %77, %cst_31 [1, 2, 3] : vector<1x2x1x128xf32> to vector<1xf32>
    %79 = vector.shape_cast %78 : vector<1xf32> to vector<1x1x1x1xf32>
    %80 = vector.extract %79[0, 0, 0, 0] : f32 from vector<1x1x1x1xf32>
    %81 = arith.extui %71 : vector<2x1x128xi1> to vector<2x1x128xi32>
    %82 = arith.sitofp %81 : vector<2x1x128xi32> to vector<2x1x128xf32>
    %83 = vector.shape_cast %82 : vector<2x1x128xf32> to vector<1x2x1x128xf32>
    %cst_32 = arith.constant dense<0.000000e+00> : vector<1xf32>
    %84 = vector.multi_reduction <add>, %83, %cst_32 [1, 2, 3] : vector<1x2x1x128xf32> to vector<1xf32>
    %85 = vector.shape_cast %84 : vector<1xf32> to vector<1x1x1x1xf32>
    %86 = vector.extract %85[0, 0, 0, 0] : f32 from vector<1x1x1x1xf32>
    %87 = arith.extui %0 : i1 to i32
    %c0_i32_33 = arith.constant 0 : i32
    %88 = arith.cmpi ne, %87, %c0_i32_33 : i32
    scf.if %88 {
      %c0_47 = arith.constant 0 : index
      %112 = memref.load %arg7[%c0_47] : memref<5xf32, #tpu.memory_space<smem>>
      memref.store %31, %arg7[%c0_47] : memref<5xf32, #tpu.memory_space<smem>>
    } else {
    }
    %true = arith.constant true
    %89 = arith.xori %0, %true : i1
    %90 = arith.extui %89 : i1 to i32
    %c0_i32_34 = arith.constant 0 : i32
    %91 = arith.cmpi ne, %90, %c0_i32_34 : i32
    scf.if %91 {
      %c0_47 = arith.constant 0 : index
      %112 = memref.load %arg7[%c0_47] : memref<5xf32, #tpu.memory_space<smem>>
      %113 = arith.addf %112, %31 : f32
      %c0_48 = arith.constant 0 : index
      %114 = memref.load %arg7[%c0_48] : memref<5xf32, #tpu.memory_space<smem>>
      memref.store %113, %arg7[%c0_48] : memref<5xf32, #tpu.memory_space<smem>>
    } else {
    }
    %92 = arith.extui %0 : i1 to i32
    %c0_i32_35 = arith.constant 0 : i32
    %93 = arith.cmpi ne, %92, %c0_i32_35 : i32
    scf.if %93 {
      %c1 = arith.constant 1 : index
      %112 = memref.load %arg7[%c1] : memref<5xf32, #tpu.memory_space<smem>>
      memref.store %51, %arg7[%c1] : memref<5xf32, #tpu.memory_space<smem>>
    } else {
    }
    %true_36 = arith.constant true
    %94 = arith.xori %0, %true_36 : i1
    %95 = arith.extui %94 : i1 to i32
    %c0_i32_37 = arith.constant 0 : i32
    %96 = arith.cmpi ne, %95, %c0_i32_37 : i32
    scf.if %96 {
      %c1 = arith.constant 1 : index
      %112 = memref.load %arg7[%c1] : memref<5xf32, #tpu.memory_space<smem>>
      %113 = arith.addf %112, %51 : f32
      %c1_47 = arith.constant 1 : index
      %114 = memref.load %arg7[%c1_47] : memref<5xf32, #tpu.memory_space<smem>>
      memref.store %113, %arg7[%c1_47] : memref<5xf32, #tpu.memory_space<smem>>
    } else {
    }
    %97 = arith.extui %0 : i1 to i32
    %c0_i32_38 = arith.constant 0 : i32
    %98 = arith.cmpi ne, %97, %c0_i32_38 : i32
    scf.if %98 {
      %c2 = arith.constant 2 : index
      %112 = memref.load %arg7[%c2] : memref<5xf32, #tpu.memory_space<smem>>
      memref.store %57, %arg7[%c2] : memref<5xf32, #tpu.memory_space<smem>>
    } else {
    }
    %true_39 = arith.constant true
    %99 = arith.xori %0, %true_39 : i1
    %100 = arith.extui %99 : i1 to i32
    %c0_i32_40 = arith.constant 0 : i32
    %101 = arith.cmpi ne, %100, %c0_i32_40 : i32
    scf.if %101 {
      %c2 = arith.constant 2 : index
      %112 = memref.load %arg7[%c2] : memref<5xf32, #tpu.memory_space<smem>>
      %113 = arith.addf %112, %57 : f32
      %c2_47 = arith.constant 2 : index
      %114 = memref.load %arg7[%c2_47] : memref<5xf32, #tpu.memory_space<smem>>
      memref.store %113, %arg7[%c2_47] : memref<5xf32, #tpu.memory_space<smem>>
    } else {
    }
    %102 = arith.extui %0 : i1 to i32
    %c0_i32_41 = arith.constant 0 : i32
    %103 = arith.cmpi ne, %102, %c0_i32_41 : i32
    scf.if %103 {
      %c3 = arith.constant 3 : index
      %112 = memref.load %arg7[%c3] : memref<5xf32, #tpu.memory_space<smem>>
      memref.store %80, %arg7[%c3] : memref<5xf32, #tpu.memory_space<smem>>
    } else {
    }
    %true_42 = arith.constant true
    %104 = arith.xori %0, %true_42 : i1
    %105 = arith.extui %104 : i1 to i32
    %c0_i32_43 = arith.constant 0 : i32
    %106 = arith.cmpi ne, %105, %c0_i32_43 : i32
    scf.if %106 {
      %c3 = arith.constant 3 : index
      %112 = memref.load %arg7[%c3] : memref<5xf32, #tpu.memory_space<smem>>
      %113 = arith.addf %112, %80 : f32
      %c3_47 = arith.constant 3 : index
      %114 = memref.load %arg7[%c3_47] : memref<5xf32, #tpu.memory_space<smem>>
      memref.store %113, %arg7[%c3_47] : memref<5xf32, #tpu.memory_space<smem>>
    } else {
    }
    %107 = arith.extui %0 : i1 to i32
    %c0_i32_44 = arith.constant 0 : i32
    %108 = arith.cmpi ne, %107, %c0_i32_44 : i32
    scf.if %108 {
      %c4 = arith.constant 4 : index
      %112 = memref.load %arg7[%c4] : memref<5xf32, #tpu.memory_space<smem>>
      memref.store %86, %arg7[%c4] : memref<5xf32, #tpu.memory_space<smem>>
    } else {
    }
    %true_45 = arith.constant true
    %109 = arith.xori %0, %true_45 : i1
    %110 = arith.extui %109 : i1 to i32
    %c0_i32_46 = arith.constant 0 : i32
    %111 = arith.cmpi ne, %110, %c0_i32_46 : i32
    scf.if %111 {
      %c4 = arith.constant 4 : index
      %112 = memref.load %arg7[%c4] : memref<5xf32, #tpu.memory_space<smem>>
      %113 = arith.addf %112, %86 : f32
      %c4_47 = arith.constant 4 : index
      %114 = memref.load %arg7[%c4_47] : memref<5xf32, #tpu.memory_space<smem>>
      memref.store %113, %arg7[%c4_47] : memref<5xf32, #tpu.memory_space<smem>>
    } else {
    }
    return
  }
  func.func @transform_0(%arg0: i32) -> (i32, i32) {
    %c0_i32 = arith.constant 0 : i32
    %c0_i32_0 = arith.constant 0 : i32
    return %c0_i32, %arg0 : i32, i32
  }
  func.func @transform_1(%arg0: i32) -> (i32, i32) {
    %c0_i32 = arith.constant 0 : i32
    %c0_i32_0 = arith.constant 0 : i32
    return %c0_i32, %arg0 : i32, i32
  }
  func.func @transform_2(%arg0: i32) -> (i32, i32) {
    %c0_i32 = arith.constant 0 : i32
    %c0_i32_0 = arith.constant 0 : i32
    return %c0_i32, %arg0 : i32, i32
  }
  func.func @transform_3(%arg0: i32) -> (i32, i32) {
    %c0_i32 = arith.constant 0 : i32
    %c0_i32_0 = arith.constant 0 : i32
    return %c0_i32, %arg0 : i32, i32
  }
  func.func @transform_4(%arg0: i32) -> (i32, i32, i32) {
    %c0_i32 = arith.constant 0 : i32
    %c0_i32_0 = arith.constant 0 : i32
    %c0_i32_1 = arith.constant 0 : i32
    return %c0_i32, %c0_i32_0, %arg0 : i32, i32, i32
  }
  func.func @transform_5(%arg0: i32) -> (i32, i32, i32) {
    %c0_i32 = arith.constant 0 : i32
    %c0_i32_0 = arith.constant 0 : i32
    %c0_i32_1 = arith.constant 0 : i32
    return %c0_i32, %c0_i32_0, %arg0 : i32, i32, i32
  }
  func.func @transform_6(%arg0: i32) -> i32 {
    %c0_i32 = arith.constant 0 : i32
    %c0_i32_0 = arith.constant 0 : i32
    return %c0_i32 : i32
  }
}

</mosaic_0001>

<bundles_post_ra>
// kernel: tpu_custom_call.1
= control target key start
LH: loop header
LB: loop body
LE: loop exit
PB: predicated region body
PF: predicated region fallthrough
CT: control target
= control target key end

     0   :  { %11 = vsyncpa [#allocation5], 0  ;;  %s924_s21 = smov 0   ;;  %s926_s22 = smov 0   ;;  %s1068_s0 = inlined_call_operand.vmem [shape: f32[8,256], index: 0, kind: input, shape index: {}]   ;;  %s1069_s1 = inlined_call_operand.vmem [shape: f32[8,256], index: 1, kind: input, shape index: {}]   ;;  %s1070_s2 = inlined_call_operand.vmem [shape: f32[2,256], index: 2, kind: input, shape index: {}]   ;;  %s1071_s3 = inlined_call_operand.vmem [shape: f32[2,256], index: 3, kind: input, shape index: {}]   ;;  %s1072_s4 = inlined_call_operand.vmem [shape: f32[2,3,256], index: 4, kind: input, shape index: {}]   ;;  %s1073_s5 = inlined_call_operand.vmem [shape: f32[2,3,256], index: 5, kind: input, shape index: {}]   ;;  %s1074_s6 = inlined_call_operand.hbm [shape: f32[5], index: 6, kind: output, shape index: {}]  }
   0x1   :  { %s928_s23 = smov 0  }
   0x2 LB: > { %s940_s24 = sadd.s32 4294967295, %s885_s23   ;;  %s943_s25 = sadd.s32 1, %s885_s23   ;;  %s885_s23 = sphi %s928_s23, %s1080_s23   ;;  %s881_s22 = sphi %s926_s22, %s1079_s22   ;;  %s877_s21 = sphi %s924_s21, %s1078_s21  }
   0x3   : > { %s125_s26 = ssub.s32 %s885_s23, %s943_s25  ;;  %s128_s27 = sadd.s32 1, %s881_s22 }
   0x4   : > { %p126_p0 = scmp.eq.s32.totalorder %s125_s26, 0  ;;  %p135_p1 = scmp.ne.s32.totalorder %s881_s22, %s877_s21 }
   0x5   : > { %p136_p2 = scmp.eq.s32.totalorder %s885_s23, 0  ;;  %p735_p4 = scmp.ge.s32.totalorder %s885_s23, 2 }
   0x6   : > { %s952_s28 = scalar_select %p126_p0, %s881_s22, %s128_s27  }
   0x7   : > { %p954_p3 = por %p136_p2, %p135_p1  ;;  %208 = sbr.rel (%p735_p4) target bundleno = 24 (0x18), region = 16 }
   0xc   : > { %239 = sbr.rel (!%p954_p3) target bundleno = 18 (0x12), region = 36  ;;  %s241_s30 = sand.u32 (%p954_p3), 1, %s881_s22  }
   0xd   : > { %s737_s7 = sshll.u32 (%p954_p3), %s885_s23, 2  ;;  %s736_s8 = sshll.u32 (%p954_p3), %s241_s30, 3 }
   0xe   : > { %s245_s11 = scalar_lea.vmem (%p954_p3), %s1072_s4, %s737_s7  ;;  %s243_s12 = scalar_lea.vmem (%p954_p3), [#allocation2], %s736_s8 }
   0xf   : > { %v262_v0 = vld [vmem:[%s245_s11] sm:$0xf] (%p954_p3)  ;;  %v264_v1 = vld [vmem:[%s245_s11 + $0x8] sm:$0xf] (%p954_p3) }
  0x10   : > { %263 = vst [vmem:[%s243_s12] sm:$0xf] (%p954_p3), %v262_v0 }
  0x11   : > { %265 = vst [vmem:[%s243_s12 + $0x4] sm:$0xf] %v264_v1 }
  0x12 PF: > { %293 = sbr.rel (!%p954_p3) target bundleno = 24 (0x18), region = 77  ;;  %s295_s13 = sand.u32 (%p954_p3), 1, %s881_s22  }
  0x13   : > { %s739_s14 = sshll.u32 (%p954_p3), %s885_s23, 2  ;;  %s738_s15 = sshll.u32 (%p954_p3), %s295_s13, 3 }
  0x14   : > { %s299_s18 = scalar_lea.vmem (%p954_p3), %s1073_s5, %s739_s14  ;;  %s297_s19 = scalar_lea.vmem (%p954_p3), [#allocation3], %s738_s15 }
  0x15   : > { %v316_v2 = vld [vmem:[%s299_s18] sm:$0xf] (%p954_p3)  ;;  %v318_v3 = vld [vmem:[%s299_s18 + $0x8] sm:$0xf] (%p954_p3) }
  0x16   : > { %317 = vst [vmem:[%s297_s19] sm:$0xf] (%p954_p3), %v316_v2 }
  0x17   : > { %319 = vst [vmem:[%s297_s19 + $0x4] sm:$0xf] %v318_v3 }
  0x18 PF: > { %p740_p5 = scmp.ge.s32.totalorder %s885_s23, 1  ;;  %p346_p6 = scmp.lt.s32.totalorder %s885_s23, 3 }
  0x1a   : > { %p347_p7 = pnand %p740_p5, %p346_p6 }
  0x1b   : > { %p404_p8 = scmp.lt.s32.totalorder (!%p347_p7), %s940_s24, 1  ;;  %s747_s20 = sshll.u32 (!%p347_p7), %s940_s24, 7 }
  0x1c   : > { %350 = sbr.rel (%p347_p7) target bundleno = 267 (0x10b), region = 118  ;;  %s353_s26 = sand.u32 (!%p347_p7), 1, %s877_s21  }
  0x1d   : > { %s741_s29 = sshll.u32 (!%p347_p7), %s353_s26, 3  ;;  %p803_p9 = scmp.eq.s32.totalorder (!%p347_p7), %s940_s24, 0 }
  0x1e   : > { %s362_s12 = scalar_lea.vmem (!%p347_p7), [#allocation3], %s741_s29  ;;  %s355_s13 = scalar_lea.vmem (!%p347_p7), [#allocation2], %s741_s29 }
  0x1f   : > { %p751_p10 = scmp.ne.s32.totalorder (!%p347_p7), %s940_s24, 0  ;;  %s620_s15 = sshll.u32 (!%p347_p7), %s1074_s6, 4  ;;  %s621_s15 = int_to_ptr.hbm [resolvable:$true] %s620_s15 }
  0x20   : > { %p813_p11 = scmp.eq.s32.totalorder (!%p347_p7), %s940_s24, 1  ;;  %s888_s18 = smov (!%p347_p7), [#allocation4]  }
  0x21   : > { %v424_v4 = vlaneseq  ;;  %v426_v5 = vstv %s747_s20  ;;  %s979_s27 = scalar_select %p404_p8, %s940_s24, 1  ;;  %vm487_vm0 = vcmask 1042432   ;;  %vm460_vm3 = vcmask 1041408   ;;  %v485_v11 = vld [vmem:[%s362_s12] sm:$0x7] }
  0x22   : > { %v486_v13 = vld [vmem:[%s362_s12 + $0x4] sm:$0x7]  ;;  %v488_v14 = vsel %vm487_vm0, %v485_v11, 0.0  ;;  %v483_v15 = vld [vmem:[%s355_s13] sm:$0x7]  ;;  %v887_v16 = vmov 0.0  }
  0x23   : > { %v425_v6 = vand.u32 127, %v424_v4  ;;  %s745_s30 = sshll.u32 %s979_s27, 1  ;;  %s743_s23 = sshll.u32 %s979_s27, 3  ;;  %v489_v18 = vrot.slane %v488_v14, 4  ;;  %v495_v19 = vsel %vm487_vm0, %v486_v13, 0.0  ;;  %v506_v23 = vmul.f32 %v485_v11, %v483_v15 }
  0x24   : > { %s419_s9 = scalar_lea.vmem %s1071_s3, %s745_s30  ;;  %s407_s21 = scalar_lea.vmem %s1068_s0, %s743_s23  ;;  %v484_v20 = vld [vmem:[%s355_s13 + $0x4] sm:$0x7]  ;;  %v496_v22 = vrot.slane %v495_v19, 4  ;;  %vm524_vm5 = vcmask 1040384  }
  0x25   : > { %v982_v7 = vadd.s32 %v426_v5, %v425_v6  ;;  %v994_v8 = vld [vmem:[%s419_s9] sm:$0x3]  ;;  %s411_s16 = scalar_lea.vmem %s1069_s1, %s743_s23  ;;  %v507_v24 = vmul.f32 %v486_v13, %v484_v20  ;;  %v490_v25 = vadd.f32 %v489_v18, %v488_v14  ;;  %v508_v27 = vsel %vm487_vm0, %v506_v23, 0.0  ;;  %s415_s19 = scalar_lea.vmem %s1070_s2, %s745_s30 }
  0x26   : > { %v421_v9 = vld [vmem:[%s407_s21] sm:$0xff]  ;;  %vm455_vm2 = vcmp.ne.f32.partialorder %v994_v8, 0.0  ;;  %v497_v26 = vadd.f32 %v496_v22, %v495_v19  ;;  %v509_v32 = vrot.slane %v508_v27, 4 }
  0x27   : > { %vm428_vm1 = vcmp.lt.s32.totalorder %v982_v7, 256  ;;  %841 = vlog2.f32 %v421_v9  ;;  %v432_v10 = vsub.f32 1.0, %v421_v9  ;;  %v515_v28 = vsel %vm487_vm0, %v507_v24, 0.0  ;;  %v422_v30 = vld [vmem:[%s411_s16] sm:$0xff] }
  0x28   : > { %vm999_vm4 = vmand %vm455_vm2, %vm428_vm1  ;;  %v491_v31 = vrot.slane %v490_v25, 2  ;;  %v516_v33 = vrot.slane %v515_v28, 4  ;;  %v498_v35 = vrot.slane %v497_v26, 2  ;;  %v510_v38 = vadd.f32 %v509_v32, %v508_v27  ;;  %v453_v50 = vld [vmem:[%s415_s19] sm:$0x3] }
  0x29   : > { %v748_v17 = vsel %vm999_vm4, 1.0, %v887_v16  ;;  %843 = vlog2.f32 %v432_v10  ;;  %v437_v42 = vsub.f32 1.0, %v422_v30  ;;  %v457_v58 = vsub.f32 %v453_v50, %v994_v8 }
  0x2a   : > { %v473_v21 = vsel %vm460_vm3, %v748_v17, 0.0  ;;  %v492_v37 = vadd.f32 %v491_v31, %v490_v25  ;;  %v517_v39 = vadd.f32 %v516_v33, %v515_v28  ;;  %v499_v43 = vadd.f32 %v498_v35, %v497_v26 }
  0x2b   : > { %474 = vadd.xlane.f32.xlu1 %v473_v21  ;;  %v511_v45 = vrot.slane %v510_v38, 2  ;;  %v458_v5 = vand.u32 2147483647, %v457_v58 }
  0x2c   : > { %v493_v44 = vrot.slane %v492_v37, 1  ;;  %v518_v46 = vrot.slane %v517_v39, 2  ;;  %v500_v49 = vrot.slane %v499_v43, 1 }
  0x2d   : > { %v842_v29 = vpop.eup %841  ;;  %v512_v52 = vadd.f32 %v511_v45, %v510_v38  ;;  %v459_v13 = vsel %vm999_vm4, %v458_v5, 0.0 }
  0x2e   : > { %v430_v34 = vmul.f32 0.6931472, %v842_v29  ;;  %v494_v51 = vadd.f32 %v493_v44, %v492_v37  ;;  %v519_v53 = vadd.f32 %v518_v46, %v517_v39  ;;  %v501_v55 = vadd.f32 %v500_v49, %v499_v43 }
  0x2f   : > { %v844_v36 = vpop.eup %843  ;;  %v513_v56 = vrot.slane %v512_v52, 1  ;;  %v461_v14 = vsel %vm460_vm3, %v459_v13, 0.0 }
  0x30   : > { %v431_v40 = vmax.f32 %v430_v34, -100.0  ;;  %v434_v41 = vmul.f32 0.6931472, %v844_v36  ;;  %vm502_vm6 = vcmp.ne.f32.partialorder %v494_v51, 0.0  ;;  %v520_v57 = vrot.slane %v519_v53, 1 }
  0x31   : > { %vm503_vm7 = vcmp.ne.f32.partialorder %v501_v55, 0.0  ;;  %vm504_vm8 = vmand %vm502_vm6, %vm428_vm1  ;;  %v514_v61 = vadd.f32 %v513_v56, %v512_v52 }
  0x32   : > { %v435_v47 = vmax.f32 %v434_v41, -100.0  ;;  %v436_v48 = vmul.f32 %v431_v40, %v422_v30  ;;  %vm505_vm9 = vmand %vm503_vm7, %vm428_vm1  ;;  %v749_v60 = vsel %vm504_vm8, 1.0, %v887_v16  ;;  %v521_v62 = vadd.f32 %v520_v57, %v519_v53 }
  0x33   : > { %v750_v0 = vsel %vm505_vm9, 1.0, %v887_v16  ;;  %v541_v1 = vsel %vm524_vm5, %v749_v60, 0.0  ;;  %v522_v3 = vsel %vm504_vm8, %v514_v61, 0.0 }
  0x34   : > { %v438_v54 = vmul.f32 %v437_v42, %v435_v47  ;;  %v542_v2 = vsel %vm524_vm5, %v750_v0, 0.0  ;;  %v523_v4 = vsel %vm505_vm9, %v521_v62, 0.0  ;;  %v525_v9 = vsel %vm524_vm5, %v522_v3, 0.0 }
  0x35   : > { %v543_v8 = vadd.f32 %v542_v2, %v541_v1  ;;  %v526_v10 = vsel %vm524_vm5, %v523_v4, 0.0 }
  0x36   : > { %v439_v59 = vadd.f32 %v438_v54, %v436_v48  ;;  %v527_v11 = vadd.f32 %v526_v10, %v525_v9 }
  0x37   : > { %544 = vadd.xlane.f32.xlu2 %v543_v8 }
  0x38   : > { %v440_v63 = vsub.f32 0.0, %v439_v59  ;;  %528 = vadd.xlane.f32.xlu1 %v527_v11 }
  0x3a   : > { %v443_v6 = vsel %vm428_vm1, %v440_v63, 0.0 }
  0x3b   : > { %444 = vadd.xlane.f32.xlu0 %v443_v6 }
  0x43   : > { %462 = vadd.xlane.f32.xlu0 %v461_v14 }
  0x9e   : > { %v475_v15 = vpop.xlane.xlu1 %474 }
  0x9f   : > { %v476_v16 = vrot.slane %v475_v15, 4 }
  0xa1   : > { %v477_v23 = vadd.f32 %v476_v16, %v475_v15 }
  0xa3   : > { %v478_v28 = vrot.slane %v477_v23, 2 }
  0xa5   : > { %v479_v35 = vadd.f32 %v478_v28, %v477_v23 }
  0xa7   : > { %v480_v40 = vrot.slane %v479_v35, 1 }
  0xa9   : > { %v481_v45 = vadd.f32 %v480_v40, %v479_v35 }
  0xaa   : > { %v545_v18 = vpop.xlane.xlu2 %544 }
  0xab   : > { %v546_v19 = vrot.slane %v545_v18, 4  ;;  %v529_v20 = vpop.xlane.xlu1 %528 }
  0xac   : > { %v530_v22 = vrot.slane %v529_v20, 4 }
  0xad   : > { %v547_v26 = vadd.f32 %v546_v19, %v545_v18 }
  0xae   : > { %v445_v17 = vpop.xlane.xlu0 %444  ;;  %v531_v25 = vadd.f32 %v530_v22, %v529_v20 }
  0xaf   : > { %v446_v7 = vrot.slane %v445_v17, 4  ;;  %v548_v32 = vrot.slane %v547_v26, 2 }
  0xb0   : > { %v532_v29 = vrot.slane %v531_v25, 2 }
  0xb1   : > { %v447_v21 = vadd.f32 %v446_v7, %v445_v17  ;;  %v549_v38 = vadd.f32 %v548_v32, %v547_v26 }
  0xb2   : > { %v533_v36 = vadd.f32 %v532_v29, %v531_v25 }
  0xb3   : > { %v448_v24 = vrot.slane %v447_v21, 2  ;;  %v550_v43 = vrot.slane %v549_v38, 1 }
  0xb4   : > { %v534_v42 = vrot.slane %v533_v36, 1 }
  0xb5   : > { %v449_v27 = vadd.f32 %v448_v24, %v447_v21  ;;  %v551_v47 = vadd.f32 %v550_v43, %v549_v38 }
  0xb6   : > { %v463_v12 = vpop.xlane.xlu0 %462  ;;  %v535_v46 = vadd.f32 %v534_v42, %v533_v36 }
  0xb7   : > { %v464_v30 = vrot.slane %v463_v12, 4  ;;  %v450_v31 = vrot.slane %v449_v27, 1 }
  0xb9   : > { %v465_v33 = vadd.f32 %v464_v30, %v463_v12  ;;  %v451_v34 = vadd.f32 %v450_v31, %v449_v27 }
  0xbb   : > { %v466_v37 = vrot.slane %v465_v33, 2  ;;  %769 = vpush %v451_v34 }
  0xbd   : > { %v467_v39 = vadd.f32 %v466_v37, %v465_v33 }
  0xbf   : > { %v468_v41 = vrot.slane %v467_v39, 1 }
  0xc1   : > { %v469_v44 = vadd.f32 %v468_v41, %v467_v39 }
  0xc3   : > { %771 = vpush %v469_v44 }
  0xc4   : > { %773 = vpush %v481_v45 }
  0xc5   : > { %775 = vpush %v535_v46 }
  0xc6   : > { %777 = vpush %v551_v47 }
  0xec   : > { %s770_s20 = spop %769 }
  0xed   : > { %780 = sst [smem:[#allocation4]] (%p803_p9), %s770_s20 }
  0xee   : > { %s562_s26 = sld [smem:[#allocation4]] }
  0xf4   : > { %s563_s27 = sadd.f32 %s770_s20, %s562_s26  ;;  %s772_s29 = spop %771 }
  0xf5   : > { %784 = sst [smem:[#allocation4 + $0x1]] (%p803_p9), %s772_s29  ;;  %s774_s30 = spop %773 }
  0xf6   : > { %782 = sst [smem:[#allocation4]] (%p751_p10), %s563_s27  ;;  %s776_s7 = spop %775 }
  0xf7   : > { %s755_s23 = sld [smem:[#allocation4 + $0x1]]  ;;  %s778_s9 = spop %777 }
  0xf8   : > { %788 = sst [smem:[#allocation4 + $0x2]] (%p803_p9), %s774_s30 }
  0xf9   : > { %s758_s8 = sld [smem:[#allocation4 + $0x2]] }
  0xfa   : > { %792 = sst [smem:[#allocation4 + $0x3]] (%p803_p9), %s776_s7 }
  0xfb   : > { %s761_s10 = sld [smem:[#allocation4 + $0x3]] }
  0xfc   : > { %796 = sst [smem:[#allocation4 + $0x4]] (%p803_p9), %s778_s9 }
  0xfd   : > { %s575_s11 = sadd.f32 %s772_s29, %s755_s23 }
  0xfe   : > { %s764_s21 = sld [smem:[#allocation4 + $0x4]] }
  0xff   : > { %786 = sst [smem:[#allocation4 + $0x1]] (%p751_p10), %s575_s11 }
 0x100   : > { %s587_s12 = sadd.f32 %s774_s30, %s758_s8 }
 0x101   : > { %s599_s16 = sadd.f32 %s776_s7, %s761_s10 }
 0x102   : > { %790 = sst [smem:[#allocation4 + $0x2]] (%p751_p10), %s587_s12 }
 0x103   : > { %794 = sst [smem:[#allocation4 + $0x3]] (%p751_p10), %s599_s16 }
 0x104   : > { %s611_s17 = sadd.f32 %s778_s9, %s764_s21 }
 0x106   : > { %798 = sst [smem:[#allocation4 + $0x4]] (%p751_p10), %s611_s17 }
 0x107   : > { %800 = dma.smem_to_hbm (%p813_p11), %s888_s18, 16, %s621_s15, [#allocation5]  }
 0x108   : > { %872 = dma.done.wait (%p813_p11), [#allocation5], 16  }
 0x109   : > { %874 = vsyncadd (%p813_p11), [#allocation5], 4294967280 }
 0x10a   : > { %629 = sfence }
 0x10b PF: > { %p14_p12 = scmp.ge.s32.totalorder %s943_s25, 4   ;;  %s1078_s21 = smov %s881_s22 }
 0x10c   : > { %s1079_s22 = smov %s952_s28  ;;  %s1080_s23 = smov %s943_s25 }
 0x10d   :  { %16 = sbr.rel (!%p14_p12) target bundleno = 2 (0x2), region = 228 }
 0x112   :  { %635 = vsyncpa [#allocation5], 1 }
 0x113   :  { %637 = vsyncpa [#allocation5 + $0x1], 1 }

</bundles_post_ra>
